<compile_context>
chip_gen: v6e
topology: v6e:2x2x1
jax: 0.10.0
libtpu: 0.0.40
codegen_flags: <defaults>
</compile_context>

<pallas_src>
import math

import jax
import jax.numpy as jnp
from jax.experimental import pallas as pl
from jax.experimental.pallas import tpu as pltpu


def _round_up(x, m):
    return ((x + m - 1) // m) * m


def _vmem_limit_bytes():
    try:
        cap = pltpu.get_tpu_info().vmem_capacity_bytes
    except Exception:
        cap = 64 * 1024 * 1024          # conservative fallback (works on v7x too)
    return int(min(cap // 2, 64 * 1024 * 1024))


def _select_tiles(m_total, kp, np_, budget_bytes):
    """Pick (tm, tk, tn) for the im2col matmul.

    Preference order (per perf review): tn = full Np first (so the activation
    blocks are fetched exactly once, never re-read across N tiles), then the
    largest M tile, shrinking the K tile first when the VMEM budget is tight.
    Live buffers are counted at double-buffer depth; LHS/RHS are bf16, the
    accumulating output block is f32.
    """
    m_cap = _round_up(m_total, 8)
    tm_cands = [t for t in (512, 256, 128, 64, 32, 16, 8) if t <= m_cap] or [m_cap]
    tn_cands = [np_] + [t for t in (512, 256, 128) if t < np_ and np_ % t == 0]
    tk_cands = [kp] + [t for t in (2048, 1024, 512, 256, 128) if t < kp and kp % t == 0]

    def vmem_usage(tm, tk, tn):
        return (2 * tm * tk * 2        # LHS blocks (bf16, double-buffered)
                + 2 * tk * tn * 2      # weight blocks (bf16, double-buffered)
                + 2 * tm * tn * 4      # output blocks (f32, double-buffered)
                + 2 * tn * 4)          # bias block

    for tn in tn_cands:
        for tm in tm_cands:
            for tk in tk_cands:
                if vmem_usage(tm, tk, tn) <= budget_bytes:
                    return tm, tk, tn
    return tm_cands[-1], 128, 128       # minimal config always fits in practice


def _conv_matmul_kernel(lhs_ref, w_ref, b_ref, o_ref):
    """Stride-2 3x3 conv as a tiled im2col matmul.

    lhs_ref : (tm, tk)  bf16 tap-major activation patches
    w_ref   : (tk, tn)  bf16 weights, (9*Cin, Cout) layout
    b_ref   : (1,  tn)  f32 bias
    o_ref   : (tm, tn)  f32 output block; resident across the K grid axis
                        (index_map ignores k) so it doubles as the accumulator.
    """
    @pl.when(pl.program_id(2) == 0)
    def _init():
        o_ref[...] = jnp.broadcast_to(b_ref[...], o_ref.shape)

    o_ref[...] += jnp.dot(lhs_ref[...], w_ref[...],
                          preferred_element_type=jnp.float32)


def downsample_forward(params, x_nchw):
    """PyTorch Downsample.forward: Conv2d(C, C, 3, stride=2, padding=1)."""
    w, b = params["w"], params["b"]          # w: (Cout, Cin, 3, 3), b: (Cout,)
    B, Cin, H, W = x_nchw.shape
    Cout = w.shape[0]
    Ho = (H - 1) // 2 + 1                    # (H + 2*1 - 3)//2 + 1
    Wo = (W - 1) // 2 + 1

    # NCHW -> NHWC (channels on lanes); bf16 operands for the MXU.
    x = jnp.transpose(x_nchw, (0, 2, 3, 1)).astype(jnp.bfloat16)

    # Spatial pad of 1, plus extra bottom/right so every 3x3/stride-2 tap
    # window exists (also covers odd H/W).
    xp = jnp.pad(x, ((0, 0),
                     (1, 1 + (2 * Ho - H)),
                     (1, 1 + (2 * Wo - W)),
                     (0, 0)))

    # Tap-major im2col LHS: column index = (dy*3 + dx)*Cin + c.
    taps = [xp[:, dy:dy + 2 * Ho:2, dx:dx + 2 * Wo:2, :]
            for dy in range(3) for dx in range(3)]
    lhs = jnp.concatenate(taps, axis=-1).reshape(B * Ho * Wo, 9 * Cin)

    # Weights -> (9*Cin, Cout), matching the tap-major LHS column order.
    w9 = jnp.transpose(w, (2, 3, 1, 0)).reshape(9 * Cin, Cout).astype(jnp.bfloat16)

    K = 9 * Cin
    Kp = _round_up(K, 128)                   # lane-aligned contraction dim
    Np = _round_up(Cout, 128)                # lane-dense output stores
    Mtot = B * Ho * Wo                       # batch folded into matmul M

    vmem_limit = _vmem_limit_bytes()
    tm, tk, tn = _select_tiles(Mtot, Kp, Np, int(vmem_limit * 0.9))
    Mp = _round_up(Mtot, tm)

    lhs = jnp.pad(lhs, ((0, Mp - Mtot), (0, Kp - K)))
    w9 = jnp.pad(w9, ((0, Kp - K), (0, Np - Cout)))
    bias = jnp.pad(b.astype(jnp.float32), ((0, Np - Cout),)).reshape(1, Np)

    grid = (Mp // tm, Np // tn, Kp // tk)    # K last (reduction axis)

    out = pl.pallas_call(
        _conv_matmul_kernel,
        grid=grid,
        out_shape=jax.ShapeDtypeStruct((Mp, Np), jnp.float32),
        in_specs=[
            pl.BlockSpec((tm, tk), lambda m, n, k: (m, k)),
            pl.BlockSpec((tk, tn), lambda m, n, k: (k, n)),
            pl.BlockSpec((1, tn), lambda m, n, k: (0, n)),
        ],
        out_specs=pl.BlockSpec((tm, tn), lambda m, n, k: (m, n)),
        compiler_params=pltpu.CompilerParams(
            dimension_semantics=("parallel", "parallel", "arbitrary"),
            vmem_limit_bytes=vmem_limit),
    )(lhs, w9, bias)

    out = out[:Mtot, :Cout].reshape(B, Ho, Wo, Cout)
    # TODO(synk): keep NHWC end-to-end (fuse this transpose into the consumer)
    # when embedded in a full UNet; kept here to match the PyTorch NCHW contract.
    return jnp.transpose(out, (0, 3, 1, 2))                      # NHWC -> NCHW


def init_downsample_params(key, channels):
    kw, kb = jax.random.split(key)
    fan_in = channels * 9
    w = jax.random.normal(kw, (channels, channels, 3, 3), jnp.float32)
    w = w / math.sqrt(fan_in)
    b = 0.1 * jax.random.normal(kb, (channels,), jnp.float32)
    return {"w": w, "b": b}


if __name__ == "__main__":
    key = jax.random.PRNGKey(0)
    pkey, xkey = jax.random.split(key)

    B, C, H, W = 2, 64, 16, 16
    params = init_downsample_params(pkey, C)
    x = jax.random.normal(xkey, (B, C, H, W), jnp.float32)   # NCHW, like PyTorch

    out = jax.block_until_ready(downsample_forward(params, x))

    assert out.shape == (B, C, H // 2, W // 2), out.shape
    assert bool(jnp.all(jnp.isfinite(out)))

    # Tight check against a reference using the same bf16 operand quantization
    # the kernel feeds the MXU (bf16 x bf16 products are exact in f32, so only
    # accumulation order differs).
    xq = x.astype(jnp.bfloat16).astype(jnp.float32)
    wq = params["w"].astype(jnp.bfloat16).astype(jnp.float32)
    ref_q = jax.lax.conv_general_dilated(
        xq, wq, window_strides=(2, 2), padding=((1, 1), (1, 1)),
        dimension_numbers=("NCHW", "OIHW", "NCHW"),
        precision=jax.lax.Precision.HIGHEST)
    ref_q = ref_q + params["b"][None, :, None, None]
    err_q = float(jnp.max(jnp.abs(out - ref_q)))
    assert err_q < 1e-2, err_q

    # Loose check against the full-f32 reference (bf16 operand rounding only).
    ref = jax.lax.conv_general_dilated(
        x, params["w"], window_strides=(2, 2), padding=((1, 1), (1, 1)),
        dimension_numbers=("NCHW", "OIHW", "NCHW"),
        precision=jax.lax.Precision.HIGHEST)
    ref = ref + params["b"][None, :, None, None]
    err = float(jnp.max(jnp.abs(out - ref)))
    assert err < 6e-2, err

    print("KERNEL_OK")
</pallas_src>

<mosaic_0001>
module attributes {stable_mosaic.version = 11 : i64} {
  func.func @_conv_matmul_kernel(%arg0: i32, %arg1: i32, %arg2: i32, %arg3: memref<128x640xbf16, #tpu.memory_space<vmem>>, %arg4: memref<640x128xbf16, #tpu.memory_space<vmem>>, %arg5: memref<1x128xf32, #tpu.memory_space<vmem>>, %arg6: memref<128x128xf32, #tpu.memory_space<vmem>>) attributes {dimension_semantics = [#tpu.dimension_semantics<parallel>, #tpu.dimension_semantics<parallel>, #tpu.dimension_semantics<arbitrary>], iteration_bounds = array<i64: 1, 1, 1>, scalar_prefetch = 0 : i64, scratch_operands = 0 : i64, tpu.core_type = #tpu.core_type<tc>, window_params = [{transform_indices = @transform_0, window_bounds = array<i64: 128, 640>}, {transform_indices = @transform_1, window_bounds = array<i64: 640, 128>}, {transform_indices = @transform_2, window_bounds = array<i64: 1, 128>}, {transform_indices = @transform_3, window_bounds = array<i64: 128, 128>}]} {
    %c0_i32 = arith.constant 0 : i32
    %0 = arith.cmpi eq, %arg2, %c0_i32 : i32
    %1 = arith.extui %0 : i1 to i32
    %c0_i32_0 = arith.constant 0 : i32
    %2 = arith.cmpi ne, %1, %c0_i32_0 : i32
    scf.if %2 {
      %c0_8 = arith.constant 0 : index
      %c0_9 = arith.constant 0 : index
      %9 = vector.load %arg5[%c0_8, %c0_9] : memref<1x128xf32, #tpu.memory_space<vmem>>, vector<1x128xf32>
      %10 = vector.shape_cast %9 : vector<1x128xf32> to vector<1x128xf32>
      %11 = vector.broadcast %10 : vector<1x128xf32> to vector<128x128xf32>
      %c0_10 = arith.constant 0 : index
      %c0_11 = arith.constant 0 : index
      %12 = vector.load %arg6[%c0_10, %c0_11] : memref<128x128xf32, #tpu.memory_space<vmem>>, vector<128x128xf32>
      tpu.vector_store %arg6[%c0_10, %c0_11], %11 {strides = array<i32>} : memref<128x128xf32, #tpu.memory_space<vmem>>, vector<128x128xf32>,
    } else {
    }
    %c0 = arith.constant 0 : index
    %c0_1 = arith.constant 0 : index
    %3 = vector.load %arg6[%c0, %c0_1] : memref<128x128xf32, #tpu.memory_space<vmem>>, vector<128x128xf32>
    %c0_2 = arith.constant 0 : index
    %c0_3 = arith.constant 0 : index
    %4 = vector.load %arg3[%c0_2, %c0_3] : memref<128x640xbf16, #tpu.memory_space<vmem>>, vector<128x640xbf16>
    %c0_4 = arith.constant 0 : index
    %c0_5 = arith.constant 0 : index
    %5 = vector.load %arg4[%c0_4, %c0_5] : memref<640x128xbf16, #tpu.memory_space<vmem>>, vector<640x128xbf16>
    %cst = arith.constant dense<0.000000e+00> : vector<128x128xf32>
    %6 = tpu.matmul %4, %5, %cst {dimension_numbers = #tpu.dot_dimension_numbers<[1], [0], [0], [1], [0, 0, 1, 1], [], []>} : vector<128x640xbf16>, vector<640x128xbf16>, vector<128x128xf32> -> vector<128x128xf32>
    %7 = arith.addf %3, %6 : vector<128x128xf32>
    %c0_6 = arith.constant 0 : index
    %c0_7 = arith.constant 0 : index
    %8 = vector.load %arg6[%c0_6, %c0_7] : memref<128x128xf32, #tpu.memory_space<vmem>>, vector<128x128xf32>
    tpu.vector_store %arg6[%c0_6, %c0_7], %7 {strides = array<i32>} : memref<128x128xf32, #tpu.memory_space<vmem>>, vector<128x128xf32>,
    return
  }
  func.func @transform_0(%arg0: i32, %arg1: i32, %arg2: i32) -> (i32, i32) {
    %c0_i32 = arith.constant 0 : i32
    return %arg0, %arg2 : i32, i32
  }
  func.func @transform_1(%arg0: i32, %arg1: i32, %arg2: i32) -> (i32, i32) {
    %c0_i32 = arith.constant 0 : i32
    return %arg2, %arg1 : i32, i32
  }
  func.func @transform_2(%arg0: i32, %arg1: i32, %arg2: i32) -> (i32, i32) {
    %c0_i32 = arith.constant 0 : i32
    %c0_i32_0 = arith.constant 0 : i32
    return %c0_i32, %arg1 : i32, i32
  }
  func.func @transform_3(%arg0: i32, %arg1: i32, %arg2: i32) -> (i32, i32) {
    %c0_i32 = arith.constant 0 : i32
    return %arg0, %arg1 : i32, i32
  }
}

</mosaic_0001>

<bundles_post_ra>
// kernel: tpu_custom_call.1
= control target key start
LH: loop header
LB: loop body
LE: loop exit
PB: predicated region body
PF: predicated region fallthrough
CT: control target
= control target key end

     0   :  { %8 = vsyncpa [#allocation3], 0  ;;  %s1546_s0 = inlined_call_operand.hbm [shape: bf16[128,640], index: 0, kind: input, shape index: {}]   ;;  %s1547_s1 = inlined_call_operand.hbm [shape: bf16[640,128], index: 1, kind: input, shape index: {}]   ;;  %s1548_s2 = inlined_call_operand.vmem [shape: f32[1,128], index: 2, kind: input, shape index: {}]   ;;  %s1549_s3 = inlined_call_operand.hbm [shape: f32[128,128], index: 3, kind: output, shape index: {}]  }
   0x1   :  { %9 = vsyncpa [#allocation6], 0 }
   0x2   :  { %10 = vsyncpa [#allocation4], 0  ;;  %s1448_s12 = smov [#allocation2]  }
   0x3   :  { %s16_s13 = sshll.u32 %s1448_s12, 4  ;;  %s17_s13 = int_to_ptr.vmem [resolvable:$true] %s16_s13 }
   0x4   :  { %s1390_s14 = scalar_lea.vmem %s17_s13, 5120  ;;  %p1395_p1 = scmp.lt.s32.totalorder %s17_s13, %s17_s13 }
   0x5   :  { %p1391_p0 = scmp.ne.s32.totalorder %s17_s13, %s1390_s14  ;;  %p1396_p2 = scmp.lt.s32.totalorder %s1390_s14, %s1390_s14 }
   0x7   :  { %p1397_p3 = por %p1396_p2, %p1395_p1 }
   0x9   :  { %p1398_p4 = pnand %p1397_p3, %p1391_p0 }
   0xb   :  { %1401 = shalt.err (!%p1398_p4)
}
   0xc   :  { %s1449_s15 = smov 320   ;;  %s1450_s16 = smov 20  }
   0xd   :  { %22 = dma.hbm_to_vmem [thread:$0]  %s1546_s0, 5120, %s17_s13, [#allocation3], %s1449_s15, %s1449_s15, %s1450_s16  }
   0xe   :  { %s1451_s19 = smov [#allocation5]  }
   0xf   :  { %s28_s20 = sshll.u32 %s1451_s19, 4  ;;  %s29_s20 = int_to_ptr.vmem [resolvable:$true] %s28_s20 }
  0x10   :  { %s1410_s21 = scalar_lea.vmem %s29_s20, 5120  ;;  %p1415_p6 = scmp.lt.s32.totalorder %s29_s20, %s29_s20 }
  0x11   :  { %p1411_p5 = scmp.ne.s32.totalorder %s29_s20, %s1410_s21  ;;  %p1416_p7 = scmp.lt.s32.totalorder %s1410_s21, %s1410_s21 }
  0x13   :  { %p1417_p8 = por %p1416_p7, %p1415_p6 }
  0x15   :  { %p1418_p9 = pnand %p1417_p8, %p1411_p5 }
  0x17   :  { %1421 = shalt.err (!%p1418_p9)
}
  0x18   :  { %s1452_s22 = smov 64   ;;  %s1453_s23 = smov 4  }
  0x19   :  { %34 = dma.hbm_to_vmem [thread:$0]  %s1547_s1, 5120, %s29_s20, [#allocation6], %s1452_s22, %s1452_s22, %s1453_s23  }
  0x1a   :  { %1442 = dma.done.wait [#allocation3], 5120  }
  0x1b   :  { %1443 = vsyncadd [#allocation3], 4294962176 }
  0x1c   :  { %1444 = dma.done.wait [#allocation6], 5120  }
  0x1d   :  { %1445 = vsyncadd [#allocation6], 4294962176  ;;  %v1286_v0 = vld [vmem:[#allocation5 + $0x78] sm:$0xff]   ;;  %v1290_v4 = vld [vmem:[#allocation5 + $0x70] sm:$0xff]  }
  0x1e   :  { %v1287_v1 = vld [vmem:[#allocation5 + $0xf8] sm:$0xff]   ;;  %1085 = vmatprep.subr.bf16.mxu0 %v1286_v0  ;;  %v1291_v5 = vld [vmem:[#allocation5 + $0xf0] sm:$0xff]   ;;  %v1294_v8 = vld [vmem:[#allocation5 + $0x68] sm:$0xff]  }
  0x1f   :  { %v1288_v2 = vld [vmem:[#allocation5 + $0x38] sm:$0xff]   ;;  %1149 = vmatprep.subr.bf16.mxu1 %v1287_v1  ;;  %v1292_v6 = vld [vmem:[#allocation5 + $0x30] sm:$0xff]   ;;  %v1295_v9 = vld [vmem:[#allocation5 + $0xe8] sm:$0xff]  }
  0x20   :  { %v1289_v3 = vld [vmem:[#allocation5 + $0xb8] sm:$0xff]   ;;  %1086 = vmatpush3.bf16.msra.mxu0 %v1288_v2  ;;  %v1293_v7 = vld [vmem:[#allocation5 + $0xb0] sm:$0xff]   ;;  %v1296_v10 = vld [vmem:[#allocation5 + $0x28] sm:$0xff]  }
  0x21   :  { %1150 = vmatpush3.bf16.msra.mxu1 %v1289_v3  ;;  %1087 = vmatprep.subr.bf16.mxu0 %v1290_v4  ;;  %v1297_v11 = vld [vmem:[#allocation5 + $0xa8] sm:$0xff]   ;;  %v1298_v12 = vld [vmem:[#allocation5 + $0x60] sm:$0xff]   ;;  %v1302_v16 = vld [vmem:[#allocation5 + $0x58] sm:$0xff]  }
  0x22   :  { %1151 = vmatprep.subr.bf16.mxu1 %v1291_v5  ;;  %v1299_v13 = vld [vmem:[#allocation5 + $0xe0] sm:$0xff]   ;;  %v1303_v17 = vld [vmem:[#allocation5 + $0xd8] sm:$0xff]   ;;  %v1306_v20 = vld [vmem:[#allocation5 + $0x50] sm:$0xff]  }
  0x23   :  { %v1300_v14 = vld [vmem:[#allocation5 + $0x20] sm:$0xff]   ;;  %v1304_v18 = vld [vmem:[#allocation5 + $0x18] sm:$0xff]   ;;  %v1307_v21 = vld [vmem:[#allocation5 + $0xd0] sm:$0xff]  }
  0x24   :  { %1088 = vmatpush3.bf16.msra.mxu0 %v1292_v6  ;;  %v1301_v15 = vld [vmem:[#allocation5 + $0xa0] sm:$0xff]   ;;  %v1305_v19 = vld [vmem:[#allocation5 + $0x98] sm:$0xff]   ;;  %v1308_v22 = vld [vmem:[#allocation5 + $0x10] sm:$0xff]  }
  0x25   :  { %1152 = vmatpush3.bf16.msra.mxu1 %v1293_v7  ;;  %1089 = vmatprep.subr.bf16.mxu0 %v1294_v8  ;;  %v1309_v23 = vld [vmem:[#allocation5 + $0x90] sm:$0xff]   ;;  %v1310_v24 = vld [vmem:[#allocation5 + $0x48] sm:$0xff]   ;;  %v1314_v28 = vld [vmem:[#allocation5 + $0x40] sm:$0xff]  }
  0x26   :  { %1153 = vmatprep.subr.bf16.mxu1 %v1295_v9  ;;  %v1311_v25 = vld [vmem:[#allocation5 + $0xc8] sm:$0xff]   ;;  %v1315_v29 = vld [vmem:[#allocation5 + $0xc0] sm:$0xff]   ;;  %v1324_v36 = vld [vmem:[#allocation5 + $0x138] sm:$0xff]  }
  0x27   :  { %v1312_v26 = vld [vmem:[#allocation5 + $0x8] sm:$0xff]   ;;  %v1316_v30 = vld [vmem:[#allocation5] sm:$0xff]   ;;  %v1331_v39 = vld [vmem:[#allocation5 + $0x130] sm:$0xff]  }
  0x28   :  { %1090 = vmatpush3.bf16.msra.mxu0 %v1296_v10  ;;  %v1313_v27 = vld [vmem:[#allocation5 + $0x88] sm:$0xff]   ;;  %v1317_v31 = vld [vmem:[#allocation5 + $0x80] sm:$0xff]   ;;  %v1334_v43 = vld [vmem:[#allocation2 + $0x5c] ss:$20 sps:$4 sm:$0xff]  }
  0x29   :  { %1154 = vmatpush3.bf16.msra.mxu1 %v1297_v11  ;;  %1091 = vmatprep.subr.bf16.mxu0 %v1298_v12  ;;  %v1318_v32 = vld [vmem:[#allocation2] ss:$20 sps:$4 sm:$0xff]   ;;  %v1320_v33 = vld [vmem:[#allocation2 + $0x4] ss:$20 sps:$4 sm:$0xff]   ;;  %v1321_v34 = vld [vmem:[#allocation2 + $0x8] ss:$20 sps:$4 sm:$0xff]  }
  0x2a   :  { %1155 = vmatprep.subr.bf16.mxu1 %v1299_v13  ;;  %v1323_v35 = vld [vmem:[#allocation2 + $0xc] ss:$20 sps:$4 sm:$0xff]   ;;  %695 = vmatprep.mubr.bf16.mxu0 %v1320_v33  ;;  %v1327_v38 = vld [vmem:[#allocation2 + $0x34] ss:$20 sps:$4 sm:$0xff]   ;;  %v1330_v41 = vld [vmem:[#allocation2 + $0x30] ss:$20 sps:$4 sm:$0xff]  }
  0x2b   :  { %792 = vmatprep.mubr.bf16.mxu1 %v1323_v35  ;;  %v1325_v37 = vld [vmem:[#allocation2 + $0x2c] ss:$20 sps:$4 sm:$0xff]   ;;  %v1329_v40 = vld [vmem:[#allocation2 + $0x28] ss:$20 sps:$4 sm:$0xff]   ;;  %v1336_v46 = vld [vmem:[#allocation2 + $0x50] ss:$20 sps:$4 sm:$0xff]  }
  0x2c   :  { %1092 = vmatpush3.bf16.msra.mxu0 %v1300_v14  ;;  %v1332_v42 = vld [vmem:[#allocation2 + $0x54] ss:$20 sps:$4 sm:$0xff]   ;;  %v1345_v45 = vld [vmem:[#allocation5 + $0x120] sm:$0xff]   ;;  %v1337_v47 = vld [vmem:[#allocation2 + $0x58] ss:$20 sps:$4 sm:$0xff]  }
  0x2d   :  { %1156 = vmatpush3.bf16.msra.mxu1 %v1301_v15  ;;  %1093 = vmatprep.subr.bf16.mxu0 %v1302_v16  ;;  %v1338_v44 = vld [vmem:[#allocation5 + $0x128] sm:$0xff]   ;;  %v1339_v48 = vld [vmem:[#allocation2 + $0x7c] ss:$20 sps:$4 sm:$0xff]   ;;  %v1341_v49 = vld [vmem:[#allocation2 + $0x84] ss:$20 sps:$4 sm:$0xff]  }
  0x2e   :  { %1157 = vmatprep.subr.bf16.mxu1 %v1303_v17  ;;  %v1352_v50 = vld [vmem:[#allocation5 + $0x118] sm:$0xff]   ;;  %v1359_v51 = vld [vmem:[#allocation5 + $0x110] sm:$0xff]   ;;  %v1366_v55 = vld [vmem:[#allocation5 + $0x108] sm:$0xff]  }
  0x2f   :  { %v1343_v52 = vld [vmem:[#allocation2 + $0x78] ss:$20 sps:$4 sm:$0xff]   ;;  %v1344_v53 = vld [vmem:[#allocation2 + $0x80] ss:$20 sps:$4 sm:$0xff]   ;;  %v1351_v59 = vld [vmem:[#allocation2 + $0xa8] ss:$20 sps:$4 sm:$0xff]  }
  0x30   :  { %1094 = vmatpush3.bf16.msra.mxu0 %v1304_v18  ;;  %v1346_v54 = vld [vmem:[#allocation2 + $0xa4] ss:$20 sps:$4 sm:$0xff]   ;;  %v1348_v56 = vld [vmem:[#allocation2 + $0xac] ss:$20 sps:$4 sm:$0xff]   ;;  %v1355_v61 = vld [vmem:[#allocation2 + $0xd4] ss:$20 sps:$4 sm:$0xff]  }
  0x31   :  { %1158 = vmatpush3.bf16.msra.mxu1 %v1305_v19  ;;  %1095 = vmatprep.subr.bf16.mxu0 %v1306_v20  ;;  %v1373_v57 = vld [vmem:[#allocation5 + $0x100] sm:$0xff]   ;;  %v1357_v62 = vld [vmem:[#allocation2 + $0xc8] ss:$20 sps:$4 sm:$0xff]   ;;  %v1365_v3 = vld [vmem:[#allocation2 + $0xf8] ss:$20 sps:$4 sm:$0xff]  }
  0x32   :  { %1159 = vmatprep.subr.bf16.mxu1 %v1307_v21  ;;  %v1350_v58 = vld [vmem:[#allocation2 + $0xa0] ss:$20 sps:$4 sm:$0xff]   ;;  %v1358_v63 = vld [vmem:[#allocation2 + $0xd0] ss:$20 sps:$4 sm:$0xff]   ;;  %v1371_v6 = vld [vmem:[#allocation2 + $0x118] ss:$20 sps:$4 sm:$0xff]  }
  0x33   :  { %v1353_v60 = vld [vmem:[#allocation2 + $0xcc] ss:$20 sps:$4 sm:$0xff]   ;;  %v1360_v0 = vld [vmem:[#allocation2 + $0xf4] ss:$20 sps:$4 sm:$0xff]   ;;  %v1362_v1 = vld [vmem:[#allocation2 + $0xfc] ss:$20 sps:$4 sm:$0xff]  }
  0x34   :  { %1096 = vmatpush3.bf16.msra.mxu0 %v1308_v22  ;;  %v1364_v2 = vld [vmem:[#allocation2 + $0xf0] ss:$20 sps:$4 sm:$0xff]   ;;  %v1372_v7 = vld [vmem:[#allocation2 + $0x120] ss:$20 sps:$4 sm:$0xff]   ;;  %v1376_v10 = vld [vmem:[#allocation2 + $0x38] ss:$20 sps:$4 sm:$0xff]  }
  0x35   :  { %1160 = vmatpush3.bf16.msra.mxu1 %v1309_v23  ;;  %1097 = vmatprep.subr.bf16.mxu0 %v1310_v24  ;;  %v1367_v4 = vld [vmem:[#allocation2 + $0x11c] ss:$20 sps:$4 sm:$0xff]   ;;  %v1369_v5 = vld [vmem:[#allocation2 + $0x124] ss:$20 sps:$4 sm:$0xff]   ;;  %v1378_v12 = vld [vmem:[#allocation2 + $0x60] ss:$20 sps:$4 sm:$0xff]  }
  0x36   :  { %1161 = vmatprep.subr.bf16.mxu1 %v1311_v25  ;;  %v1374_v8 = vld [vmem:[#allocation2 + $0x10] ss:$20 sps:$4 sm:$0xff]   ;;  %v1377_v11 = vld [vmem:[#allocation2 + $0xd8] ss:$20 sps:$4 sm:$0xff]   ;;  %v1379_v13 = vld [vmem:[#allocation2 + $0x100] ss:$20 sps:$4 sm:$0xff]  }
  0x37   :  { %v1375_v9 = vld [vmem:[#allocation2 + $0xb0] ss:$20 sps:$4 sm:$0xff]   ;;  %v1380_v14 = vld [vmem:[#allocation2 + $0x88] ss:$20 sps:$4 sm:$0xff]  }
  0x38   :  { %1098 = vmatpush3.bf16.msra.mxu0 %v1312_v26  ;;  %v1381_v15 = vld [vmem:[#allocation2 + $0x128] ss:$20 sps:$4 sm:$0xff]  }
  0x39   :  { %1162 = vmatpush3.bf16.msra.mxu1 %v1313_v27  ;;  %1099 = vmatprep.subr.bf16.mxu0 %v1314_v28 }
  0x3a   :  { %1163 = vmatprep.subr.bf16.mxu1 %v1315_v29 }
  0x3c   :  { %1100 = vmatpush3.bf16.msra.mxu0 %v1316_v30 }
  0x3d   :  { %1164 = vmatpush3.bf16.msra.mxu1 %v1317_v31  ;;  %1229 = vmatprep.subr.bf16.mxu0 %v1324_v36 }
  0x3e   :  { %1261 = vmatprep.subr.bf16.mxu1 %v1324_v36 }
  0x3f   :  { %696 = vmatmul.mubr.bf16.vlgmr.msra.gmra.mxu0 %v1318_v32 }
  0x40   :  { %793 = vmatmul.mubr.bf16.vlgmr.msra.gmra.mxu1 %v1321_v34  ;;  %1230 = vmatpush3.bf16.msra.mxu0 %v1324_v36 }
  0x41   :  { %1269 = vmatpush3.bf16.msra.mxu1 %v1324_v36  ;;  %703 = vmatprep.mubr.bf16.mxu0 %v1325_v37 }
  0x42   :  { %800 = vmatprep.mubr.bf16.mxu1 %v1327_v38  ;;  %1231 = vmatprep.subr.bf16.mxu0 %v1331_v39 }
  0x43   :  { %1262 = vmatprep.subr.bf16.mxu1 %v1331_v39 }
  0x44   :  { %1232 = vmatpush3.bf16.msra.mxu0 %v1331_v39 }
  0x45   :  { %1270 = vmatpush3.bf16.msra.mxu1 %v1331_v39  ;;  %1233 = vmatprep.subr.bf16.mxu0 %v1338_v44 }
  0x46   :  { %1263 = vmatprep.subr.bf16.mxu1 %v1338_v44 }
  0x47   :  { %704 = vmatmul.mubr.bf16.gmra.mxu0 %v1329_v40 }
  0x48   :  { %801 = vmatmul.mubr.bf16.gmra.mxu1 %v1330_v41  ;;  %711 = vmatprep.mubr.bf16.mxu0 %v1332_v42 }
  0x49   :  { %808 = vmatprep.mubr.bf16.mxu1 %v1334_v43  ;;  %1234 = vmatpush3.bf16.msra.mxu0 %v1338_v44 }
  0x4a   :  { %1271 = vmatpush3.bf16.msra.mxu1 %v1338_v44  ;;  %1235 = vmatprep.subr.bf16.mxu0 %v1345_v45 }
  0x4b   :  { %1264 = vmatprep.subr.bf16.mxu1 %v1345_v45 }
  0x4d   :  { %1236 = vmatpush3.bf16.msra.mxu0 %v1345_v45 }
  0x4e   :  { %1272 = vmatpush3.bf16.msra.mxu1 %v1345_v45  ;;  %1237 = vmatprep.subr.bf16.mxu0 %v1352_v50 }
  0x4f   :  { %712 = vmatmul.mubr.bf16.gmra.mxu0 %v1336_v46  ;;  %1265 = vmatprep.subr.bf16.mxu1 %v1352_v50 }
  0x50   :  { %809 = vmatmul.mubr.bf16.gmra.mxu1 %v1337_v47  ;;  %719 = vmatprep.mubr.bf16.mxu0 %v1339_v48 }
  0x51   :  { %816 = vmatprep.mubr.bf16.mxu1 %v1341_v49  ;;  %1238 = vmatpush3.bf16.msra.mxu0 %v1352_v50 }
  0x52   :  { %1273 = vmatpush3.bf16.msra.mxu1 %v1352_v50  ;;  %1239 = vmatprep.subr.bf16.mxu0 %v1359_v51 }
  0x53   :  { %1266 = vmatprep.subr.bf16.mxu1 %v1359_v51 }
  0x55   :  { %1240 = vmatpush3.bf16.msra.mxu0 %v1359_v51 }
  0x56   :  { %1274 = vmatpush3.bf16.msra.mxu1 %v1359_v51  ;;  %1241 = vmatprep.subr.bf16.mxu0 %v1366_v55 }
  0x57   :  { %720 = vmatmul.mubr.bf16.gmra.mxu0 %v1343_v52  ;;  %1267 = vmatprep.subr.bf16.mxu1 %v1366_v55 }
  0x58   :  { %817 = vmatmul.mubr.bf16.gmra.mxu1 %v1344_v53  ;;  %727 = vmatprep.mubr.bf16.mxu0 %v1346_v54 }
  0x59   :  { %824 = vmatprep.mubr.bf16.mxu1 %v1348_v56  ;;  %1242 = vmatpush3.bf16.msra.mxu0 %v1366_v55 }
  0x5a   :  { %1275 = vmatpush3.bf16.msra.mxu1 %v1366_v55  ;;  %1243 = vmatprep.subr.bf16.mxu0 %v1373_v57 }
  0x5b   :  { %1268 = vmatprep.subr.bf16.mxu1 %v1373_v57 }
  0x5d   :  { %1244 = vmatpush3.bf16.msra.mxu0 %v1373_v57 }
  0x5e   :  { %1276 = vmatpush3.bf16.msra.mxu1 %v1373_v57 }
  0x5f   :  { %728 = vmatmul.mubr.bf16.gmra.mxu0 %v1350_v58 }
  0x60   :  { %825 = vmatmul.mubr.bf16.gmra.mxu1 %v1351_v59  ;;  %735 = vmatprep.mubr.bf16.mxu0 %v1353_v60 }
  0x61   :  { %832 = vmatprep.mubr.bf16.mxu1 %v1355_v61 }
  0x67   :  { %736 = vmatmul.mubr.bf16.gmra.mxu0 %v1357_v62 }
  0x68   :  { %833 = vmatmul.mubr.bf16.gmra.mxu1 %v1358_v63  ;;  %743 = vmatprep.mubr.bf16.mxu0 %v1360_v0 }
  0x69   :  { %840 = vmatprep.mubr.bf16.mxu1 %v1362_v1 }
  0x6f   :  { %744 = vmatmul.mubr.bf16.gmra.mxu0 %v1364_v2 }
  0x70   :  { %841 = vmatmul.mubr.bf16.gmra.mxu1 %v1365_v3  ;;  %751 = vmatprep.mubr.bf16.mxu0 %v1367_v4 }
  0x71   :  { %848 = vmatprep.mubr.bf16.mxu1 %v1369_v5 }
  0x77   :  { %752 = vmatmul.mubr.bf16.gmra.mxu0 %v1371_v6 }
  0x78   :  { %849 = vmatmul.mubr.bf16.gmra.mxu1 %v1372_v7  ;;  %1245 = vmatprep.mubr.bf16.mxu0 %v1374_v8 }
  0x79   :  { %1253 = vmatprep.mubr.bf16.mxu1 %v1375_v9 }
  0x7f   :  { %1246 = vmatmul.mubr.bf16.vlgmr.msra.gmra.mxu0 %v1376_v10 }
  0x80   :  { %1254 = vmatmul.mubr.bf16.vlgmr.msra.gmra.mxu1 %v1377_v11  ;;  %1249 = vmatprep.mubr.bf16.mxu0 %v1378_v12 }
  0x81   :  { %1257 = vmatprep.mubr.bf16.mxu1 %v1379_v13 }
  0x87   :  { %1250 = vmatmul.mubr.bf16.gmra.mxu0 %v1380_v14 }
  0x88   :  { %1258 = vmatmul.mubr.bf16.gmra.mxu1 %v1381_v15 }
  0xff   :  { %v1101_v16 = vpop.f32.mrf.mxu0 }
 0x100   :  { %v1165_v17 = vpop.f32.mrf.mxu1 }
 0x101   :  { %v1102_v18 = vpop.f32.mrf.mxu0 }
 0x102   :  { %v1166_v19 = vpop.f32.mrf.mxu1  ;;  %v1103_v10 = vadd.f32 %v1102_v18, %v1101_v16 }
 0x103   :  { %v1104_v20 = vpop.f32.mrf.mxu0  ;;  %v1167_v11 = vadd.f32 %v1166_v19, %v1165_v17 }
 0x104   :  { %v1168_v21 = vpop.f32.mrf.mxu1 }
 0x105   :  { %v1105_v22 = vpop.f32.mrf.mxu0 }
 0x106   :  { %v1169_v23 = vpop.f32.mrf.mxu1  ;;  %v1106_v13 = vadd.f32 %v1105_v22, %v1104_v20  ;;  %v795_v20 = vadd.f32 %v1167_v11, %v1103_v10 }
 0x107   :  { %v1107_v24 = vpop.f32.mrf.mxu0  ;;  %v1170_v14 = vadd.f32 %v1169_v23, %v1168_v21 }
 0x108   :  { %v1171_v25 = vpop.f32.mrf.mxu1 }
 0x109   :  { %v1108_v26 = vpop.f32.mrf.mxu0  ;;  %v798_v22 = vadd.f32 %v1170_v14, %v1106_v13 }
 0x10a   :  { %v1172_v27 = vpop.f32.mrf.mxu1  ;;  %v1109_v15 = vadd.f32 %v1108_v26, %v1107_v24 }
 0x10b   :  { %v1110_v28 = vpop.f32.mrf.mxu0 }
 0x10c   :  { %v1174_v29 = vpop.f32.mrf.mxu1 }
 0x10d   :  { %v1111_v30 = vpop.f32.mrf.mxu0 }
 0x10e   :  { %v1175_v31 = vpop.f32.mrf.mxu1 }
 0x10f   :  { %v1113_v32 = vpop.f32.mrf.mxu0 }
 0x110   :  { %v1177_v33 = vpop.f32.mrf.mxu1 }
 0x111   :  { %v1114_v34 = vpop.f32.mrf.mxu0 }
 0x112   :  { %v1178_v35 = vpop.f32.mrf.mxu1 }
 0x113   :  { %v1483_v36 = vpop.f32.mrf.mxu0 }
 0x114   :  { %1550 = vst [vmem:[#allocation11_spill] sm:$0xff] %v1483_v36  ;;  %v1485_v37 = vpop.f32.mrf.mxu1 }
 0x115   :  { %1551 = vst [vmem:[#allocation12_spill] sm:$0xff] %v1485_v37  ;;  %v1487_v38 = vpop.f32.mrf.mxu0 }
 0x116   :  { %1552 = vst [vmem:[#allocation13_spill] sm:$0xff] %v1487_v38  ;;  %v1489_v39 = vpop.f32.mrf.mxu1  ;;  %v1179_v38 = vadd.f32 %v1178_v35, %v1177_v33 }
 0x117   :  { %1553 = vst [vmem:[#allocation14_spill] sm:$0xff] %v1489_v39  ;;  %v1119_v40 = vpop.f32.mrf.mxu0  ;;  %v1173_v39 = vadd.f32 %v1172_v27, %v1171_v25  ;;  %v1510_v25 = vld [vmem:[%s1548_s2] ss:$0 sm:$0xff]  ;;  %s1454_s2 = smov [#allocation7]  }
 0x118   :  { %v1183_v41 = vpop.f32.mrf.mxu1  ;;  %s991_s26 = sshll.u32 %s1454_s2, 4  ;;  %s992_s26 = int_to_ptr.vmem [resolvable:$true] %s991_s26 }
 0x119   :  { %v1120_v42 = vpop.f32.mrf.mxu0  ;;  %v803_v19 = vadd.f32 %v1173_v39, %v1109_v15  ;;  %s1422_s27 = scalar_lea.vmem %s992_s26, 2048  ;;  %p1427_p11 = scmp.lt.s32.totalorder %s992_s26, %s992_s26 }
 0x11a   :  { %v1184_v43 = vpop.f32.mrf.mxu1  ;;  %v1121_v18 = vadd.f32 %v1120_v42, %v1119_v40  ;;  %p1423_p10 = scmp.ne.s32.totalorder %s992_s26, %s1422_s27  ;;  %p1428_p12 = scmp.lt.s32.totalorder %s1422_s27, %s1422_s27 }
 0x11b   :  { %v1491_v44 = vpop.f32.mrf.mxu0  ;;  %v1185_v21 = vadd.f32 %v1184_v43, %v1183_v41 }
 0x11c   :  { %1554 = vst [vmem:[#allocation15_spill] sm:$0xff] %v1491_v44  ;;  %v1493_v45 = vpop.f32.mrf.mxu1  ;;  %v1176_v44 = vadd.f32 %v1175_v31, %v1174_v29  ;;  %p1429_p13 = por %p1428_p12, %p1427_p11 }
 0x11d   :  { %1555 = vst [vmem:[#allocation16_spill] sm:$0xff] %v1493_v45  ;;  %v1495_v46 = vpop.f32.mrf.mxu0  ;;  %v1563_v29 = vld [vmem:[#allocation13_spill] sm:$0xff] }
 0x11e   :  { %1556 = vst [vmem:[#allocation17_spill] sm:$0xff] %v1495_v46  ;;  %v1497_v47 = vpop.f32.mrf.mxu1  ;;  %v1569_v13 = vld [vmem:[#allocation14_spill] sm:$0xff]  ;;  %p1430_p0 = pnand %p1429_p13, %p1423_p10 }
 0x11f   :  { %1557 = vst [vmem:[#allocation18_spill] sm:$0xff] %v1497_v47  ;;  %v1125_v48 = vpop.f32.mrf.mxu0 }
 0x120   :  { %v1189_v49 = vpop.f32.mrf.mxu1 }
 0x121   :  { %v1126_v50 = vpop.f32.mrf.mxu0 }
 0x122   :  { %v1190_v51 = vpop.f32.mrf.mxu1  ;;  %v1127_v36 = vadd.f32 %v1126_v50, %v1125_v48 }
 0x123   :  { %v1128_v52 = vpop.f32.mrf.mxu0 }
 0x124   :  { %v1192_v53 = vpop.f32.mrf.mxu1 }
 0x125   :  { %v1129_v54 = vpop.f32.mrf.mxu0 }
 0x126   :  { %v1193_v55 = vpop.f32.mrf.mxu1  ;;  %v1130_v35 = vadd.f32 %v1129_v54, %v1128_v52  ;;  %v1565_v54 = vld [vmem:[#allocation17_spill] sm:$0xff] }
 0x127   :  { %v1131_v56 = vpop.f32.mrf.mxu0  ;;  %v1194_v39 = vadd.f32 %v1193_v55, %v1192_v53 }
 0x128   :  { %v1195_v57 = vpop.f32.mrf.mxu1 }
 0x129   :  { %v1132_v58 = vpop.f32.mrf.mxu0 }
 0x12a   :  { %v1196_v59 = vpop.f32.mrf.mxu1  ;;  %v1133_v47 = vadd.f32 %v1132_v58, %v1131_v56  ;;  %v819_v58 = vadd.f32 %v1185_v21, %v1121_v18 }
 0x12b   :  { %v1134_v60 = vpop.f32.mrf.mxu0  ;;  %v1197_v45 = vadd.f32 %v1196_v59, %v1195_v57 }
 0x12c   :  { %v1198_v61 = vpop.f32.mrf.mxu1 }
 0x12d   :  { %v1135_v62 = vpop.f32.mrf.mxu0  ;;  %v835_v27 = vadd.f32 %v1197_v45, %v1133_v47 }
 0x12e   :  { %v1199_v63 = vpop.f32.mrf.mxu1  ;;  %v1136_v23 = vadd.f32 %v1135_v62, %v1134_v60  ;;  %v830_v62 = vadd.f32 %v1194_v39, %v1130_v35 }
 0x12f   :  { %v1137_v0 = vpop.f32.mrf.mxu0  ;;  %v1200_v24 = vadd.f32 %v1199_v63, %v1198_v61  ;;  %v1566_v63 = vld [vmem:[#allocation16_spill] sm:$0xff] }
 0x130   :  { %v1201_v1 = vpop.f32.mrf.mxu1 }
 0x131   :  { %v1138_v2 = vpop.f32.mrf.mxu0  ;;  %v838_v57 = vadd.f32 %v1200_v24, %v1136_v23 }
 0x132   :  { %v1202_v3 = vpop.f32.mrf.mxu1  ;;  %v1139_v59 = vadd.f32 %v1138_v2, %v1137_v0 }
 0x133   :  { %v1499_v4 = vpop.f32.mrf.mxu0 }
 0x134   :  { %1558 = vst [vmem:[#allocation19_spill] sm:$0xff] %v1499_v4  ;;  %v1501_v5 = vpop.f32.mrf.mxu1  ;;  %v1112_v4 = vadd.f32 %v1111_v30, %v1110_v28  ;;  %v1562_v28 = vld [vmem:[#allocation11_spill] sm:$0xff] }
 0x135   :  { %1559 = vst [vmem:[#allocation20_spill] sm:$0xff] %v1501_v5  ;;  %v1503_v6 = vpop.f32.mrf.mxu0  ;;  %v1115_v5 = vadd.f32 %v1114_v34, %v1113_v32  ;;  %v1514_v30 = vadd.f32 %v1563_v29, %v1562_v28 }
 0x136   :  { %1560 = vst [vmem:[#allocation21_spill] sm:$0xff] %v1503_v6  ;;  %v1505_v7 = vpop.f32.mrf.mxu1  ;;  %v806_v33 = vadd.f32 %v1176_v44, %v1112_v4  ;;  %v1203_v44 = vadd.f32 %v1202_v3, %v1201_v1  ;;  %v1567_v4 = vld [vmem:[#allocation18_spill] sm:$0xff] }
 0x137   :  { %1561 = vst [vmem:[#allocation22_spill] sm:$0xff] %v1505_v7  ;;  %v1143_v8 = vpop.f32.mrf.mxu0  ;;  %v1191_v7 = vadd.f32 %v1190_v51, %v1189_v49  ;;  %v811_v34 = vadd.f32 %v1179_v38, %v1115_v5  ;;  %v1188_v5 = vadd.f32 %v1567_v4, %v1566_v63 }
 0x138   :  { %v1207_v9 = vpop.f32.mrf.mxu1 }
 0x139   :  { %v1144_v12 = vpop.f32.mrf.mxu0  ;;  %v827_v42 = vadd.f32 %v1191_v7, %v1127_v36  ;;  %v1564_v36 = vld [vmem:[#allocation15_spill] sm:$0xff] }
 0x13a   :  { %v1208_v37 = vpop.f32.mrf.mxu1  ;;  %v1145_v43 = vadd.f32 %v1144_v12, %v1143_v8  ;;  %v1568_v12 = vld [vmem:[#allocation12_spill] sm:$0xff] }
 0x13b   :  { %v1146_v46 = vpop.f32.mrf.mxu0  ;;  %v1209_v48 = vadd.f32 %v1208_v37, %v1207_v9  ;;  %v1124_v37 = vadd.f32 %v1565_v54, %v1564_v36  ;;  %v1182_v14 = vadd.f32 %v1569_v13, %v1568_v12  ;;  %v1570_v21 = vld [vmem:[#allocation19_spill] sm:$0xff] }
 0x13c   :  { %v1210_v6 = vpop.f32.mrf.mxu1  ;;  %v1572_v24 = vld [vmem:[#allocation20_spill] sm:$0xff] }
 0x13d   :  { %v1147_v16 = vpop.f32.mrf.mxu0  ;;  %v851_v3 = vadd.f32 %v1209_v48, %v1145_v43  ;;  %v814_v43 = vadd.f32 %v1182_v14, %v1514_v30 }
 0x13e   :  { %v1211_v17 = vpop.f32.mrf.mxu1  ;;  %v1148_v7 = vadd.f32 %v1147_v16, %v1146_v46  ;;  %v1573_v46 = vld [vmem:[#allocation22_spill] sm:$0xff] }
 0x13f   :  { %v1247_v26 = vpop.f32.mrf.mxu0  ;;  %v1212_v8 = vadd.f32 %v1211_v17, %v1210_v6  ;;  %v1206_v6 = vadd.f32 %v1573_v46, %v1572_v24 }
 0x140   :  { %v900_v31 = vadd.f32 %v1247_v26, %v803_v19  ;;  %v1255_v32 = vpop.f32.mrf.mxu1 }
 0x141   :  { %v932_v40 = vadd.f32 %v1255_v32, %v835_v27  ;;  %v891_v41 = vpop.f32.mrf.mxu0  ;;  %v854_v39 = vadd.f32 %v1212_v8, %v1148_v7 }
 0x142   :  { %v956_v49 = vadd.f32 %v1510_v25, %v900_v31  ;;  %v892_v50 = vadd.f32 %v891_v41, %v795_v20  ;;  %v923_v51 = vpop.f32.mrf.mxu1  ;;  %v843_v20 = vadd.f32 %v1203_v44, %v1139_v59  ;;  %v822_v31 = vadd.f32 %v1188_v5, %v1124_v37 }
 0x143   :  { %v964_v45 = vadd.f32 %v1510_v25, %v932_v40  ;;  %v924_v47 = vadd.f32 %v923_v51, %v827_v42  ;;  %v1248_v56 = vpop.f32.mrf.mxu0 }
 0x144   :  { %972 = vst [vmem:[#allocation7 + $0x10] sm:$0xff] %v956_v49  ;;  %v954_v38 = vadd.f32 %v1510_v25, %v892_v50  ;;  %v903_v52 = vadd.f32 %v1248_v56, %v806_v33  ;;  %v1256_v53 = vpop.f32.mrf.mxu1 }
 0x145   :  { %980 = vst [vmem:[#allocation7 + $0x50] sm:$0xff] %v964_v45  ;;  %v962_v55 = vadd.f32 %v1510_v25, %v924_v47  ;;  %v935_v60 = vadd.f32 %v1256_v53, %v838_v57  ;;  %v894_v61 = vpop.f32.mrf.mxu0 }
 0x146   :  { %970 = vst [vmem:[#allocation7] sm:$0xff] %v954_v38  ;;  %v957_v0 = vadd.f32 %v1510_v25, %v903_v52  ;;  %v895_v1 = vadd.f32 %v894_v61, %v798_v22  ;;  %v926_v2 = vpop.f32.mrf.mxu1  ;;  %v1571_v22 = vld [vmem:[#allocation21_spill] sm:$0xff] }
 0x147   :  { %978 = vst [vmem:[#allocation7 + $0x40] sm:$0xff] %v962_v55  ;;  %v965_v9 = vadd.f32 %v1510_v25, %v935_v60  ;;  %v927_v10 = vadd.f32 %v926_v2, %v830_v62  ;;  %v1251_v11 = vpop.f32.mrf.mxu0  ;;  %v1142_v23 = vadd.f32 %v1571_v22, %v1570_v21 }
 0x148   :  { %973 = vst [vmem:[#allocation7 + $0x18] sm:$0xff] %v957_v0  ;;  %v955_v15 = vadd.f32 %v1510_v25, %v895_v1  ;;  %v916_v18 = vadd.f32 %v1251_v11, %v819_v58  ;;  %v1259_v19 = vpop.f32.mrf.mxu1 }
 0x149   :  { %981 = vst [vmem:[#allocation7 + $0x58] sm:$0xff] %v965_v9  ;;  %v963_v16 = vadd.f32 %v1510_v25, %v927_v10  ;;  %v948_v17 = vadd.f32 %v1259_v19, %v851_v3  ;;  %v907_v26 = vpop.f32.mrf.mxu0  ;;  %v846_v50 = vadd.f32 %v1206_v6, %v1142_v23 }
 0x14a   :  { %971 = vst [vmem:[#allocation7 + $0x8] sm:$0xff] %v955_v15  ;;  %v960_v27 = vadd.f32 %v1510_v25, %v916_v18  ;;  %v908_v28 = vadd.f32 %v907_v26, %v811_v34  ;;  %v939_v29 = vpop.f32.mrf.mxu1 }
 0x14b   :  { %979 = vst [vmem:[#allocation7 + $0x48] sm:$0xff] %v963_v16  ;;  %v968_v32 = vadd.f32 %v1510_v25, %v948_v17  ;;  %v940_v33 = vadd.f32 %v939_v29, %v843_v20  ;;  %v1252_v35 = vpop.f32.mrf.mxu0 }
 0x14c   :  { %976 = vst [vmem:[#allocation7 + $0x30] sm:$0xff] %v960_v27  ;;  %v958_v40 = vadd.f32 %v1510_v25, %v908_v28  ;;  %v919_v41 = vadd.f32 %v1252_v35, %v822_v31  ;;  %v1260_v42 = vpop.f32.mrf.mxu1 }
 0x14d   :  { %984 = vst [vmem:[#allocation7 + $0x70] sm:$0xff] %v968_v32  ;;  %v966_v48 = vadd.f32 %v1510_v25, %v940_v33  ;;  %v951_v49 = vadd.f32 %v1260_v42, %v854_v39  ;;  %v910_v34 = vpop.f32.mrf.mxu0 }
 0x14e   :  { %974 = vst [vmem:[#allocation7 + $0x20] sm:$0xff] %v958_v40  ;;  %v961_v51 = vadd.f32 %v1510_v25, %v919_v41  ;;  %v911_v45 = vadd.f32 %v910_v34, %v814_v43  ;;  %v942_v47 = vpop.f32.mrf.mxu1 }
 0x14f   :  { %982 = vst [vmem:[#allocation7 + $0x60] sm:$0xff] %v966_v48  ;;  %v969_v56 = vadd.f32 %v1510_v25, %v951_v49  ;;  %v943_v57 = vadd.f32 %v942_v47, %v846_v50 }
 0x150   :  { %977 = vst [vmem:[#allocation7 + $0x38] sm:$0xff] %v961_v51  ;;  %v959_v30 = vadd.f32 %v1510_v25, %v911_v45 }
 0x151   :  { %985 = vst [vmem:[#allocation7 + $0x78] sm:$0xff] %v969_v56  ;;  %v967_v58 = vadd.f32 %v1510_v25, %v943_v57 }
 0x152   :  { %975 = vst [vmem:[#allocation7 + $0x28] sm:$0xff] %v959_v30 }
 0x153   :  { %983 = vst [vmem:[#allocation7 + $0x68] sm:$0xff] %v967_v58 }
 0x154   :  { %1433 = shalt.err (!%p1430_p0)
}
 0x155   :  { %s1455_s28 = smov 128   ;;  %s1456_s29 = smov 8  }
 0x156   :  { %997 = dma.vmem_to_hbm [thread:$0]  %s992_s26, 2048, %s1549_s3, [#allocation4], %s1455_s28, %s1455_s28, %s1456_s29  }
 0x157   :  { %1446 = dma.done.wait [#allocation4], 2048  }
 0x158   :  { %1447 = vsyncadd [#allocation4], 4294965248 }
 0x159   :  { %1001 = vsyncpa [#allocation3], 1 }
 0x15a   :  { %1002 = vsyncpa [#allocation6], 1 }
 0x15b   :  { %1003 = vsyncpa [#allocation4], 1 }

</bundles_post_ra>
